<compile_context>
chip_gen: v5e
topology: v5e:2x2
jax: 0.10.0
libtpu: 0.0.40
codegen_flags: <defaults>
</compile_context>

<pallas_src>
import math
import functools

import jax
import jax.numpy as jnp
from jax import lax
from jax.experimental import pallas as pl
from jax.experimental.pallas import tpu as pltpu


# ----------------------------------------------------------------------------
# helpers
# ----------------------------------------------------------------------------
def _pick_tile(dim, cap, granule):
    """Largest t <= cap that divides `dim` and is a multiple of `granule`;
    falls back to the full dim (always a legal block size)."""
    if dim <= cap:
        return dim
    t = (cap // granule) * granule
    while t >= granule:
        if dim % t == 0:
            return t
        t -= granule
    return dim


# ----------------------------------------------------------------------------
# Tiled linear:  y = x @ w + b     (bf16 MXU operands, f32 accumulation)
# ----------------------------------------------------------------------------
def _linear_kernel(x_ref, w_ref, b_ref, o_ref, acc_ref):
    kk = pl.program_id(2)

    @pl.when(kk == 0)
    def _():
        acc_ref[...] = jnp.zeros_like(acc_ref)

    acc_ref[...] += jnp.dot(x_ref[...], w_ref[...],
                            preferred_element_type=jnp.float32)

    @pl.when(kk == pl.num_programs(2) - 1)
    def _():
        o_ref[...] = (acc_ref[...] + b_ref[...]).astype(o_ref.dtype)


def linear(x, w, b, *, out_dtype=jnp.bfloat16, tm_cap=512, tn_cap=512, tk_cap=512):
    """x: (N, E_in) bf16 @ w: (E_in, E_out) bf16 + b: (E_out,) f32 -> (N, E_out)."""
    n, e_in = x.shape
    e_out = w.shape[1]
    tm = _pick_tile(n, tm_cap, 8)
    tn = _pick_tile(e_out, tn_cap, 128)
    tk = _pick_tile(e_in, tk_cap, 128)
    grid = (n // tm, e_out // tn, e_in // tk)

    bytes_in = x.dtype.itemsize
    cost = pl.CostEstimate(
        flops=2 * n * e_in * e_out,
        transcendentals=0,
        bytes_accessed=bytes_in * (n * e_in + e_in * e_out)
        + 4 * e_out + jnp.dtype(out_dtype).itemsize * n * e_out,
    )
    return pl.pallas_call(
        _linear_kernel,
        out_shape=jax.ShapeDtypeStruct((n, e_out), out_dtype),
        grid=grid,
        in_specs=[
            pl.BlockSpec((tm, tk), lambda i, j, kk: (i, kk)),
            pl.BlockSpec((tk, tn), lambda i, j, kk: (kk, j)),
            pl.BlockSpec((1, tn), lambda i, j, kk: (0, j)),
        ],
        out_specs=pl.BlockSpec((tm, tn), lambda i, j, kk: (i, j)),
        scratch_shapes=[pltpu.VMEM((tm, tn), jnp.float32)],
        compiler_params=pltpu.CompilerParams(
            dimension_semantics=("parallel", "parallel", "arbitrary")
        ),
        cost_estimate=cost,
    )(x, w, b.reshape(1, e_out).astype(jnp.float32))


# ----------------------------------------------------------------------------
# Flash-attention (online softmax) over the (B, S, E) layout.
# All heads of one (batch, q-tile, kv-tile) step are processed in the kernel
# via static lane slices, so no HBM head transposes are needed and the output
# store is a lane-dense (tq, E) slab.
# ----------------------------------------------------------------------------
def _flash_kernel(*refs, num_heads, head_dim, has_mask, mask_heads):
    if has_mask:
        q_ref, k_ref, v_ref, m_ref, o_ref, m_sc, l_sc, acc_sc = refs
    else:
        q_ref, k_ref, v_ref, o_ref, m_sc, l_sc, acc_sc = refs
        m_ref = None
    kv = pl.program_id(2)

    @pl.when(kv == 0)
    def _():
        m_sc[...] = jnp.full_like(m_sc, -1e30)
        l_sc[...] = jnp.zeros_like(l_sc)
        acc_sc[...] = jnp.zeros_like(acc_sc)

    q = q_ref[0]          # (tq, E) bf16 — 1/sqrt(D) already folded into W_q
    k = k_ref[0]          # (tk, E) bf16
    v = v_ref[0]          # (tk, E) bf16

    for h in range(num_heads):            # static unrolled per-head loop
        sl = slice(h * head_dim, (h + 1) * head_dim)
        # q_h . k_h contracted on D — no explicit transpose of the K tile.
        s = lax.dot_general(q[:, sl], k[:, sl], (((1,), (1,)), ((), ())),
                            preferred_element_type=jnp.float32)   # (tq, tk) f32
        if has_mask:
            s = s + m_ref[0, h if mask_heads > 1 else 0].astype(jnp.float32)

        m_prev = m_sc[h]                                          # (tq, 1)
        m_new = jnp.maximum(m_prev, jnp.max(s, axis=-1, keepdims=True))
        alpha = jnp.exp(m_prev - m_new)
        p = jnp.exp(s - m_new)                                    # f32 softmax math
        l_sc[h] = alpha * l_sc[h] + jnp.sum(p, axis=-1, keepdims=True)
        acc_sc[:, sl] = alpha * acc_sc[:, sl] + jnp.dot(
            p.astype(jnp.bfloat16), v[:, sl],
            preferred_element_type=jnp.float32)
        m_sc[h] = m_new

    @pl.when(kv == pl.num_programs(2) - 1)
    def _():
        for h in range(num_heads):
            sl = slice(h * head_dim, (h + 1) * head_dim)
            acc_sc[:, sl] = acc_sc[:, sl] * pl.reciprocal(l_sc[h], approx=True)
        o_ref[0] = acc_sc[...].astype(o_ref.dtype)   # one lane-dense (tq, E) store


def flash_attention(q, k, v, mask, num_heads, *, tq_cap=256, tk_cap=512,
                    out_dtype=jnp.bfloat16):
    """q: (B, Sq, E), k/v: (B, Sk, E) bf16, mask: None | (Bm, Hm, Sq, Sk) additive."""
    b, sq, e = q.shape
    sk = k.shape[1]
    d = e // num_heads
    tq = _pick_tile(sq, tq_cap, 8)
    tk = _pick_tile(sk, tk_cap, 128)
    grid = (b, sq // tq, sk // tk)

    in_specs = [
        pl.BlockSpec((1, tq, e), lambda bi, qi, ki: (bi, qi, 0)),
        pl.BlockSpec((1, tk, e), lambda bi, qi, ki: (bi, ki, 0)),
        pl.BlockSpec((1, tk, e), lambda bi, qi, ki: (bi, ki, 0)),
    ]
    args = [q, k, v]
    has_mask = mask is not None
    mask_heads = 1
    mask_bytes = 0
    if has_mask:
        mb, mh = int(mask.shape[0]), int(mask.shape[1])
        mask_heads = mh
        mask_bytes = int(mask.size) * mask.dtype.itemsize

        def mask_map(bi, qi, ki):
            return ((bi if mb > 1 else 0), 0, qi, ki)

        in_specs.append(pl.BlockSpec((1, mh, tq, tk), mask_map))
        args.append(mask)

    cost = pl.CostEstimate(
        flops=4 * b * sq * sk * e,
        transcendentals=b * num_heads * sq * sk,
        bytes_accessed=2 * b * (2 * sq * e + 2 * sk * e) + mask_bytes,
    )

    kernel = functools.partial(
        _flash_kernel, num_heads=num_heads, head_dim=d,
        has_mask=has_mask, mask_heads=mask_heads)
    return pl.pallas_call(
        kernel,
        out_shape=jax.ShapeDtypeStruct((b, sq, e), out_dtype),
        grid=grid,
        in_specs=in_specs,
        out_specs=pl.BlockSpec((1, tq, e), lambda bi, qi, ki: (bi, qi, 0)),
        scratch_shapes=[
            pltpu.VMEM((num_heads, tq, 1), jnp.float32),   # running max m (per head)
            pltpu.VMEM((num_heads, tq, 1), jnp.float32),   # running denom l (per head)
            pltpu.VMEM((tq, e), jnp.float32),              # head-packed output accumulator
        ],
        compiler_params=pltpu.CompilerParams(
            dimension_semantics=("parallel", "parallel", "arbitrary")
        ),
        cost_estimate=cost,
    )(*args)


# ----------------------------------------------------------------------------
# Module wrapper
# ----------------------------------------------------------------------------
class MultiheadAttentionPallas:
    def __init__(self, embed_dim, num_heads, dropout_rate, batch_size, key):
        self.embed_dim = embed_dim
        self.num_heads = num_heads
        self.batch_size = batch_size
        self.d_qkv = embed_dim // num_heads
        self.dropout_rate = dropout_rate  # eval-mode: identity
        self.last_attention = None
        # TODO(synk): the flash kernel never materializes the full softmax matrix,
        # so PyTorch's `last_attention` side output is not reproduced.

        ks = jax.random.split(key, 8)
        bound = 1.0 / math.sqrt(embed_dim)

        def init_linear(kw, kb):
            # stored as (in, out) so forward is x @ W + b
            w = jax.random.uniform(kw, (embed_dim, embed_dim), jnp.float32, -bound, bound)
            b = jax.random.uniform(kb, (embed_dim,), jnp.float32, -bound, bound)
            return w, b

        # f32 master parameters (used by the pure-JAX reference)
        self.w_q, self.b_q = init_linear(ks[0], ks[1])
        self.w_k, self.b_k = init_linear(ks[2], ks[3])
        self.w_v, self.b_v = init_linear(ks[4], ks[5])
        self.w_out, self.b_out = init_linear(ks[6], ks[7])

        # bf16 kernel weights; 1/sqrt(D) folded into the Q projection so the
        # flash inner loop does no per-step scaling.
        scale = 1.0 / math.sqrt(self.d_qkv)
        self.w_q_bf = (self.w_q * scale).astype(jnp.bfloat16)
        self.b_q_s = self.b_q * scale
        self.w_k_bf = self.w_k.astype(jnp.bfloat16)
        self.w_v_bf = self.w_v.astype(jnp.bfloat16)
        self.w_out_bf = self.w_out.astype(jnp.bfloat16)

        # fused QKV weights for the self-attention fast path (one GEMM, x read once)
        self.w_qkv_bf = jnp.concatenate(
            [self.w_q * scale, self.w_k, self.w_v], axis=1).astype(jnp.bfloat16)
        self.b_qkv_s = jnp.concatenate([self.b_q * scale, self.b_k, self.b_v], axis=0)

    def __call__(self, q, k, v, key_padding_mask=None, causal_mask=None):
        B, Sq, E = q.shape
        Sk = k.shape[1]
        H = self.num_heads

        # ---- projections: tiled bf16 GEMMs, bf16 outputs (fused QKV when q is k is v)
        qb = q.astype(jnp.bfloat16).reshape(B * Sq, E)
        if (q is k) and (k is v):
            qkv = linear(qb, self.w_qkv_bf, self.b_qkv_s)            # (B*Sq, 3E) bf16
            qp, kp, vp = qkv[:, :E], qkv[:, E:2 * E], qkv[:, 2 * E:]
            Sk = Sq
        else:
            kb = k.astype(jnp.bfloat16).reshape(B * Sk, E)
            vb = v.astype(jnp.bfloat16).reshape(B * Sk, E)
            qp = linear(qb, self.w_q_bf, self.b_q_s)
            kp = linear(kb, self.w_k_bf, self.b_k)
            vp = linear(vb, self.w_v_bf, self.b_v)

        # head-interleaved (B, S, E) layout — NO (B,S,H,D)<->(B,H,S,D) transposes;
        # the flash kernel splits heads with static lane slices in VMEM.
        qh = qp.reshape(B, Sq, E)
        kh = kp.reshape(B, Sk, E)
        vh = vp.reshape(B, Sk, E)

        # combined additive mask — kept at its given shape (bf16), never broadcast
        # to (B,H,S,S) in HBM unless it was already given that way.
        if key_padding_mask is None and causal_mask is None:
            mask = None
        elif key_padding_mask is None:
            mask = causal_mask.astype(jnp.bfloat16)
        elif causal_mask is None:
            mask = key_padding_mask.astype(jnp.bfloat16)
        else:
            mask = (key_padding_mask + causal_mask).astype(jnp.bfloat16)

        # attention (flash kernel, grid over (B, q-tiles, kv-tiles), all heads/step)
        attn = flash_attention(qh, kh, vh, mask, H)                  # (B, Sq, E) bf16

        # output projection directly on the head-packed layout
        out = linear(attn.reshape(B * Sq, E), self.w_out_bf, self.b_out,
                     out_dtype=jnp.float32)
        # dropout1 / dropout2: eval-mode identity
        return out.reshape(B, Sq, E)


# ----------------------------------------------------------------------------
# Pure-JAX reference for a sanity check
# ----------------------------------------------------------------------------
def reference_forward(mod, q, k, v, key_padding_mask=None, causal_mask=None):
    B, S, E = q.shape
    H, D = mod.num_heads, mod.d_qkv

    def proj(x, w, b):
        return (x.reshape(B * S, E) @ w + b).reshape(B, S, H, D).transpose(0, 2, 1, 3)

    qp = proj(q, mod.w_q, mod.b_q)
    kp = proj(k, mod.w_k, mod.b_k)
    vp = proj(v, mod.w_v, mod.b_v)
    s = jnp.einsum("bhqd,bhkd->bhqk", qp, kp) / math.sqrt(D)
    if key_padding_mask is not None:
        s = s + key_padding_mask
    if causal_mask is not None:
        s = s + causal_mask
    p = jax.nn.softmax(s, axis=-1)
    o = jnp.einsum("bhqk,bhkd->bhqd", p, vp).transpose(0, 2, 1, 3).reshape(B, S, E)
    return (o.reshape(B * S, E) @ mod.w_out + mod.b_out).reshape(B, S, E)


if __name__ == "__main__":
    embed_dim = 32
    num_heads = 4
    batch_size = 2
    seq_len = 8
    dropout_rate = 0.1  # eval mode -> identity

    key = jax.random.PRNGKey(0)
    k_params, k_q, k_k, k_v = jax.random.split(key, 4)

    mod = MultiheadAttentionPallas(embed_dim, num_heads, dropout_rate, batch_size, k_params)

    q = jax.random.normal(k_q, (batch_size, seq_len, embed_dim), jnp.float32)
    k = jax.random.normal(k_k, (batch_size, seq_len, embed_dim), jnp.float32)
    v = jax.random.normal(k_v, (batch_size, seq_len, embed_dim), jnp.float32)

    tol = dict(atol=4e-2, rtol=4e-2)  # bf16 weights/activations vs f32 reference

    # 1) distinct q/k/v, no masks
    out = jax.block_until_ready(mod(q, k, v))
    ref = reference_forward(mod, q, k, v)
    assert out.shape == (batch_size, seq_len, embed_dim)
    assert jnp.allclose(out, ref, **tol), "mismatch vs reference (no mask)"

    # 2) self-attention (fused QKV path) with a (1,1,S,S) causal mask
    causal = jnp.where(
        jnp.triu(jnp.ones((seq_len, seq_len), jnp.float32), k=1) > 0, -1e9, 0.0
    )[None, None]
    out2 = jax.block_until_ready(mod(q, q, q, causal_mask=causal))
    ref2 = reference_forward(mod, q, q, q, causal_mask=causal)
    assert jnp.allclose(out2, ref2, **tol), "mismatch vs reference (causal, fused QKV)"

    # 3) per-(batch, head) additive padding mask of full (B, H, S, S) shape
    kpm = -1e9 * (
        jax.random.uniform(jax.random.PRNGKey(1),
                           (batch_size, num_heads, seq_len, seq_len)) < 0.2
    ).astype(jnp.float32)
    out3 = jax.block_until_ready(mod(q, k, v, key_padding_mask=kpm))
    ref3 = reference_forward(mod, q, k, v, key_padding_mask=kpm)
    assert jnp.allclose(out3, ref3, **tol), "mismatch vs reference (per-head padding mask)"

    print("KERNEL_OK")
</pallas_src>

<mosaic_0001>
module attributes {stable_mosaic.version = 11 : i64} {
  func.func @_linear_kernel(%arg0: i32, %arg1: i32, %arg2: i32, %arg3: memref<16x32xbf16, #tpu.memory_space<vmem>>, %arg4: memref<32x32xbf16, #tpu.memory_space<vmem>>, %arg5: memref<1x32xf32, #tpu.memory_space<vmem>>, %arg6: memref<16x32xbf16, #tpu.memory_space<vmem>>, %arg7: memref<16x32xf32, #tpu.memory_space<vmem>>) attributes {dimension_semantics = [#tpu.dimension_semantics<parallel>, #tpu.dimension_semantics<parallel>, #tpu.dimension_semantics<arbitrary>], iteration_bounds = array<i64: 1, 1, 1>, scalar_prefetch = 0 : i64, scratch_operands = 1 : i64, tpu.core_type = #tpu.core_type<tc>, window_params = [{transform_indices = @transform_0, window_bounds = array<i64: 16, 32>}, {transform_indices = @transform_1, window_bounds = array<i64: 32, 32>}, {transform_indices = @transform_2, window_bounds = array<i64: 1, 32>}, {transform_indices = @transform_3, window_bounds = array<i64: 16, 32>}]} {
    %c0_i32 = arith.constant 0 : i32
    %0 = arith.cmpi eq, %arg2, %c0_i32 : i32
    %1 = arith.extui %0 : i1 to i32
    %c0_i32_0 = arith.constant 0 : i32
    %2 = arith.cmpi ne, %1, %c0_i32_0 : i32
    scf.if %2 {
      %cst_10 = arith.constant 0.000000e+00 : f32
      %12 = vector.broadcast %cst_10 : f32 to vector<16x32xf32>
      %c0_11 = arith.constant 0 : index
      %c0_12 = arith.constant 0 : index
      %13 = vector.load %arg7[%c0_11, %c0_12] : memref<16x32xf32, #tpu.memory_space<vmem>>, vector<16x32xf32>
      tpu.vector_store %arg7[%c0_11, %c0_12], %12 {strides = array<i32>} : memref<16x32xf32, #tpu.memory_space<vmem>>, vector<16x32xf32>,
    } else {
    }
    %c0 = arith.constant 0 : index
    %c0_1 = arith.constant 0 : index
    %3 = vector.load %arg7[%c0, %c0_1] : memref<16x32xf32, #tpu.memory_space<vmem>>, vector<16x32xf32>
    %c0_2 = arith.constant 0 : index
    %c0_3 = arith.constant 0 : index
    %4 = vector.load %arg3[%c0_2, %c0_3] : memref<16x32xbf16, #tpu.memory_space<vmem>>, vector<16x32xbf16>
    %c0_4 = arith.constant 0 : index
    %c0_5 = arith.constant 0 : index
    %5 = vector.load %arg4[%c0_4, %c0_5] : memref<32x32xbf16, #tpu.memory_space<vmem>>, vector<32x32xbf16>
    %cst = arith.constant dense<0.000000e+00> : vector<16x32xf32>
    %6 = tpu.matmul %4, %5, %cst {dimension_numbers = #tpu.dot_dimension_numbers<[1], [0], [0], [1], [0, 0, 1, 1], [], []>} : vector<16x32xbf16>, vector<32x32xbf16>, vector<16x32xf32> -> vector<16x32xf32>
    %7 = arith.addf %3, %6 : vector<16x32xf32>
    %c0_6 = arith.constant 0 : index
    %c0_7 = arith.constant 0 : index
    %8 = vector.load %arg7[%c0_6, %c0_7] : memref<16x32xf32, #tpu.memory_space<vmem>>, vector<16x32xf32>
    tpu.vector_store %arg7[%c0_6, %c0_7], %7 {strides = array<i32>} : memref<16x32xf32, #tpu.memory_space<vmem>>, vector<16x32xf32>,
    %c0_i32_8 = arith.constant 0 : i32
    %9 = arith.cmpi eq, %arg2, %c0_i32_8 : i32
    %10 = arith.extui %9 : i1 to i32
    %c0_i32_9 = arith.constant 0 : i32
    %11 = arith.cmpi ne, %10, %c0_i32_9 : i32
    scf.if %11 {
      %c0_10 = arith.constant 0 : index
      %c0_11 = arith.constant 0 : index
      %12 = vector.load %arg7[%c0_10, %c0_11] : memref<16x32xf32, #tpu.memory_space<vmem>>, vector<16x32xf32>
      %c0_12 = arith.constant 0 : index
      %c0_13 = arith.constant 0 : index
      %13 = vector.load %arg5[%c0_12, %c0_13] : memref<1x32xf32, #tpu.memory_space<vmem>>, vector<1x32xf32>
      %14 = vector.broadcast %13 : vector<1x32xf32> to vector<16x32xf32>
      %15 = arith.addf %12, %14 : vector<16x32xf32>
      %16 = arith.truncf %15 : vector<16x32xf32> to vector<16x32xbf16>
      %c0_14 = arith.constant 0 : index
      %c0_15 = arith.constant 0 : index
      %17 = vector.load %arg6[%c0_14, %c0_15] : memref<16x32xbf16, #tpu.memory_space<vmem>>, vector<16x32xbf16>
      tpu.vector_store %arg6[%c0_14, %c0_15], %16 {strides = array<i32>} : memref<16x32xbf16, #tpu.memory_space<vmem>>, vector<16x32xbf16>,
    } else {
    }
    return
  }
  func.func @transform_0(%arg0: i32, %arg1: i32, %arg2: i32) -> (i32, i32) {
    %c0_i32 = arith.constant 0 : i32
    return %arg0, %arg2 : i32, i32
  }
  func.func @transform_1(%arg0: i32, %arg1: i32, %arg2: i32) -> (i32, i32) {
    %c0_i32 = arith.constant 0 : i32
    return %arg2, %arg1 : i32, i32
  }
  func.func @transform_2(%arg0: i32, %arg1: i32, %arg2: i32) -> (i32, i32) {
    %c0_i32 = arith.constant 0 : i32
    %c0_i32_0 = arith.constant 0 : i32
    return %c0_i32, %arg1 : i32, i32
  }
  func.func @transform_3(%arg0: i32, %arg1: i32, %arg2: i32) -> (i32, i32) {
    %c0_i32 = arith.constant 0 : i32
    return %arg0, %arg1 : i32, i32
  }
}

</mosaic_0001>

<bundles_post_ra>
// kernel: tpu_custom_call.1
= control target key start
LH: loop header
LB: loop body
LE: loop exit
PB: predicated region body
PF: predicated region fallthrough
CT: control target
= control target key end

     0   :  { %8 = vsyncpa [#allocation4], 0  ;;  %s291_s0 = inlined_call_operand.hbm [shape: bf16[16,32], index: 0, kind: input, shape index: {}]   ;;  %s292_s1 = inlined_call_operand.hbm [shape: bf16[32,32], index: 1, kind: input, shape index: {}]   ;;  %s293_s2 = inlined_call_operand.vmem [shape: f32[1,32], index: 2, kind: input, shape index: {}]   ;;  %s294_s3 = inlined_call_operand.hbm [shape: bf16[16,32], index: 3, kind: output, shape index: {}]  }
   0x1   :  { %9 = vsyncpa [#allocation7], 0 }
   0x2   :  { %10 = vsyncpa [#allocation5], 0  ;;  %s15_s14 = sshll.u32 %s291_s0, 4  ;;  %s239_s15 = smov [#allocation3]   ;;  %s16_s14 = int_to_ptr.hbm [resolvable:$true] %s15_s14 }
   0x3   :  { %s17_s16 = sshll.u32 %s239_s15, 4  ;;  %s28_s19 = sshll.u32 %s292_s1, 4  ;;  %s18_s16 = int_to_ptr.vmem [resolvable:$true] %s17_s16  ;;  %s29_s19 = int_to_ptr.hbm [resolvable:$true] %s28_s19 }
   0x4   :  { %s240_s20 = smov 64   ;;  %s241_s21 = smov 4  }
   0x5   :  { %23 = dma.hbm_to_vmem [thread:$0]  %s16_s14, 128, %s18_s16, [#allocation4], %s240_s20, %s240_s20, %s241_s21  }
   0x6   :  { %s242_s22 = smov [#allocation6]  }
   0x7   :  { %s30_s23 = sshll.u32 %s242_s22, 4  ;;  %s31_s23 = int_to_ptr.vmem [resolvable:$true] %s30_s23 }
   0x8   :  { %36 = dma.hbm_to_vmem [thread:$0]  %s29_s19, 256, %s31_s23, [#allocation7], %s240_s20, %s240_s20, %s241_s21  }
   0x9   :  { %233 = dma.done.wait [#allocation4], 128  }
   0xa   :  { %234 = vsyncadd [#allocation4], 4294967168 }
   0xb   :  { %235 = dma.done.wait [#allocation7], 256  }
   0xc   :  { %236 = vsyncadd [#allocation7], 4294967040  ;;  %vm52_vm0 = vcmask 261120   ;;  %v243_v0 = vmov 0.0   ;;  %v153_v1 = vld [vmem:[#allocation6 + $0x8] sm:$0xff]  ;;  %v152_v2 = vld [vmem:[#allocation6] sm:$0xff] }
   0xd   :  { %53 = vst.msk [vmem:[#allocation2] sm:$0xff] %vm52_vm0, %v243_v0  ;;  %90 = vmatpush.bf16.msra.mxu0 %v153_v1  ;;  %v151_v3 = vld [vmem:[#allocation3] sm:$0xff]  ;;  %v160_v8 = vld [vmem:[%s293_s2] ss:$0 sm:$0xff]  ;;  %vm115_vm1 = vcmask 257024   ;;  %s244_s24 = smov [#allocation8]  }
   0xe   :  { %54 = vst.msk [vmem:[#allocation2 + $0x8] sm:$0xff] %vm52_vm0, %v243_v0  ;;  %s122_s25 = sshll.u32 %s244_s24, 4  ;;  %s124_s28 = sshll.u32 %s294_s3, 4  ;;  %s123_s25 = int_to_ptr.vmem [resolvable:$true] %s122_s25  ;;  %s125_s28 = int_to_ptr.hbm [resolvable:$true] %s124_s28 }
  0x11   :  { %91 = vmatpush.bf16.msra.mxu0 %v152_v2 }
  0x14   :  { %150 = vmatmul.msk.bf16.vlgmr.msra.gmra.mxu0 %vm52_vm0, %v151_v3  ;;  %v55_v4 = vld [vmem:[#allocation2] sm:$0xff] }
  0x15   :  { %v56_v7 = vld [vmem:[#allocation2 + $0x8] sm:$0xff] }
  0x91   :  { %v93_v5 = vpop.f32.mrf.mxu0 }
  0x92   :  { %v98_v6 = vadd.f32 %v93_v5, %v55_v4 }
  0x94   :  { %100 = vst.msk [vmem:[#allocation2] sm:$0xff] %vm52_vm0, %v98_v6 }
  0x99   :  { %v95_v9 = vpop.f32.mrf.mxu0 }
  0x9a   :  { %v99_v10 = vadd.f32 %v95_v9, %v56_v7 }
  0x9b   :  { %v105_v11 = vld [vmem:[#allocation2] sm:$0xff] }
  0x9c   :  { %101 = vst.msk [vmem:[#allocation2 + $0x8] sm:$0xff] %vm52_vm0, %v99_v10  ;;  %v111_v12 = vadd.f32 %v160_v8, %v105_v11 }
  0x9e   :  { %v113_v13 = vpack.c.bf16 %v111_v12, %v111_v12 }
  0xa0   :  { %116 = vst.msk [vmem:[#allocation8] sm:$0xf] %vm115_vm1, %v113_v13 }
  0xa3   :  { %v106_v14 = vld [vmem:[#allocation2 + $0x8] sm:$0xff] }
  0xa4   :  { %v112_v15 = vadd.f32 %v160_v8, %v106_v14 }
  0xa6   :  { %v114_v16 = vpack.c.bf16 %v112_v15, %v112_v15 }
  0xa8   :  { %117 = vst.msk [vmem:[#allocation8 + $0x4] sm:$0xf] %vm115_vm1, %v114_v16 }
  0xa9   :  { %130 = dma.vmem_to_hbm [thread:$0]  %s123_s25, 128, %s125_s28, [#allocation5], %s240_s20, %s240_s20, %s241_s21  }
  0xaa   :  { %237 = dma.done.wait [#allocation5], 128  }
  0xab   :  { %238 = vsyncadd [#allocation5], 4294967168 }
  0xac   :  { %135 = vsyncpa [#allocation4], 1 }
  0xad   :  { %136 = vsyncpa [#allocation7], 1 }
  0xae   :  { %137 = vsyncpa [#allocation5], 1 }

</bundles_post_ra>
